<compile_context>
chip_gen: v7x
topology: tpu7x:2x2x1
jax: 0.10.0
libtpu: 0.0.40
codegen_flags: <defaults>
</compile_context>

<pallas_src>
import jax
import jax.numpy as jnp
from jax.experimental import pallas as pl
from jax.experimental.pallas import tpu as pltpu


def channel_attention_kernel(x_ref, a_ref, b_ref, o_ref):
    # x_ref block: (TB, C, W) — TB batch rows per grid step.
    x = x_ref[...]                                   # I/O dtype
    inv_w = 1.0 / x.shape[-1]

    # ---- channel descriptors: reduce over the window (lane) axis, f32 accumulation ----
    f_max = jnp.max(x, axis=-1).astype(jnp.float32)                 # (TB, C)
    f_avg = jnp.sum(x.astype(jnp.float32), axis=-1) * inv_w         # (TB, C)
    feats = f_max + f_avg                                           # (TB, C)

    # ---- folded affine MLP: single (C, C) matmul + bias (no activation in the module) ----
    z = jnp.dot(feats, a_ref[...], preferred_element_type=jnp.float32) + b_ref[...]
    gate = jax.nn.sigmoid(z)                                        # EUP transcendental

    # ---- elementwise epilogue in the I/O dtype ----
    o_ref[...] = gate.astype(o_ref.dtype)[:, :, None] * x


def _vmem_capacity_bytes():
    """Physical VMEM capacity (per TensorCore) with a conservative fallback."""
    try:
        return int(pltpu.get_tpu_info().vmem_capacity_bytes)
    except Exception:
        return 64 * 1024 * 1024          # v7x per-TC size; safe everywhere


def _choose_block_b(batch, c, w, itemsize, vmem_cap):
    """Pick the batch tile size (rows per grid step).

    The x tile is double-buffered for both input and output (4 live copies), so the
    per-tile budget is ~60% of physical VMEM divided by 4.  The tile is only shrunk
    to manufacture >= 4 grid steps (so v7x's two TensorCores each get >= 2 pipelined
    steps) when doing so keeps tiles above ~1 MiB; single-TC chips simply take the
    largest tile that fits.
    """
    per_row = max(1, c * w * itemsize)
    budget = int(vmem_cap * 0.6) // 4
    tb = max(1, budget // per_row)
    tb = min(tb, batch)

    min_good_rows = max(1, (1 << 20) // per_row)     # ~1 MiB worth of rows
    if batch >= 4 * min_good_rows:
        tb = min(tb, max(min_good_rows, pl.cdiv(batch, 4)))

    if tb >= 8:                                      # sublane-clean / full MXU rows
        tb -= tb % 8
    return int(max(1, tb))


def channel_attention(x, w1_t, b1, w2_t, b2, *, block_b=None):
    """x: (B, C, W); w1_t: (C, H); b1: (1, H); w2_t: (H, C); b2: (1, C).

    Weights are the transposed Linear weights (in_features, out_features).
    """
    B, C, W = x.shape

    # Fold the two Linears (the module has no activation between them) into one
    # (C, C) affine map applied to (f_max + f_avg).
    w1f = w1_t.astype(jnp.float32)
    w2f = w2_t.astype(jnp.float32)
    a_fold = w1f @ w2f                                               # (C, C)
    b_fold = 2.0 * (b1.astype(jnp.float32) @ w2f + b2.astype(jnp.float32))  # (1, C)

    itemsize = jnp.dtype(x.dtype).itemsize
    vmem_cap = _vmem_capacity_bytes()

    if block_b is None:
        block_b = _choose_block_b(B, C, W, itemsize, vmem_cap)
    block_b = max(1, min(int(block_b), B))
    grid_b = pl.cdiv(B, block_b)
    # If B % block_b != 0, the padded rows of the last block only flow through
    # per-row computation and their writeback is clipped — no masking needed.

    # Raise the scoped VMEM limit toward physical capacity (default is 16/32 MiB).
    vmem_limit = int(vmem_cap) * 3 // 4

    cost = pl.CostEstimate(
        flops=2 * B * C * C + 3 * B * C * W,
        transcendentals=B * C,
        bytes_accessed=2 * B * C * W * itemsize + (C * C + C) * 4,
    )

    return pl.pallas_call(
        channel_attention_kernel,
        out_shape=jax.ShapeDtypeStruct((B, C, W), x.dtype),
        grid_spec=pltpu.PrefetchScalarGridSpec(
            num_scalar_prefetch=0,
            grid=(grid_b,),
            in_specs=[
                pl.BlockSpec((block_b, C, W), lambda b: (b, 0, 0)),  # x, batch tile
                pl.BlockSpec((C, C), lambda b: (0, 0)),              # folded weight (constant)
                pl.BlockSpec((1, C), lambda b: (0, 0)),              # folded bias   (constant)
            ],
            out_specs=pl.BlockSpec((block_b, C, W), lambda b: (b, 0, 0)),
        ),
        compiler_params=pltpu.CompilerParams(
            dimension_semantics=("parallel",),
            vmem_limit_bytes=vmem_limit,
        ),
        cost_estimate=cost,
    )(x, a_fold, b_fold)


def channel_attention_ref(x, w1_t, b1, w2_t, b2):
    # Pure-JAX reference mirroring the PyTorch forward (two explicit MLP calls).
    W = x.shape[-1]
    f_max = jnp.max(x, axis=-1)
    f_avg = jnp.sum(x, axis=-1) / W

    def mlp(v):
        return (v @ w1_t + b1) @ w2_t + b2

    gate = jax.nn.sigmoid(mlp(f_max) + mlp(f_avg))
    return gate[..., None] * x


if __name__ == "__main__":
    B, C, Wsz, r = 2, 4, 16, 2          # batch, feature_num, window_size, r
    H = C * r

    key = jax.random.PRNGKey(0)
    kx, k1, k2, k3, k4 = jax.random.split(key, 5)

    x = jax.random.normal(kx, (B, C, Wsz), dtype=jnp.float32)

    # Linear weights stored transposed: (in_features, out_features).
    w1_t = 0.1 * jax.random.normal(k1, (C, H), dtype=jnp.float32)
    b1 = 0.1 * jax.random.normal(k2, (1, H), dtype=jnp.float32)
    w2_t = 0.1 * jax.random.normal(k3, (H, C), dtype=jnp.float32)
    b2 = 0.1 * jax.random.normal(k4, (1, C), dtype=jnp.float32)

    # Default path (auto-chosen batch tile; B=2 fits in a single large tile).
    out = channel_attention(x, w1_t, b1, w2_t, b2)
    jax.block_until_ready(out)
    ref = channel_attention_ref(x, w1_t, b1, w2_t, b2)
    assert out.shape == (B, C, Wsz)
    assert jnp.allclose(out, ref, atol=1e-5, rtol=1e-5)

    # Multi-step grid path: exercises batch tiling / pipelining across grid steps.
    B2 = 16
    x2 = jax.random.normal(jax.random.PRNGKey(1), (B2, C, Wsz), dtype=jnp.float32)
    out2 = channel_attention(x2, w1_t, b1, w2_t, b2, block_b=8)
    jax.block_until_ready(out2)
    ref2 = channel_attention_ref(x2, w1_t, b1, w2_t, b2)
    assert out2.shape == (B2, C, Wsz)
    assert jnp.allclose(out2, ref2, atol=1e-5, rtol=1e-5)

    print("KERNEL_OK")
</pallas_src>

<mosaic_0001>
module attributes {stable_mosaic.version = 11 : i64} {
  func.func @channel_attention_kernel(%arg0: i32, %arg1: memref<2x4x16xf32, #tpu.memory_space<vmem>>, %arg2: memref<4x4xf32, #tpu.memory_space<vmem>>, %arg3: memref<1x4xf32, #tpu.memory_space<vmem>>, %arg4: memref<2x4x16xf32, #tpu.memory_space<vmem>>) attributes {dimension_semantics = [#tpu.dimension_semantics<parallel>], iteration_bounds = array<i64: 1>, scalar_prefetch = 0 : i64, scratch_operands = 0 : i64, tpu.core_type = #tpu.core_type<tc>, window_params = [{transform_indices = @transform_0, window_bounds = array<i64: 2, 4, 16>}, {pipeline_mode = #tpu.pipeline_mode<synchronous>, transform_indices = @transform_1, window_bounds = array<i64: 4, 4>}, {pipeline_mode = #tpu.pipeline_mode<synchronous>, transform_indices = @transform_2, window_bounds = array<i64: 1, 4>}, {transform_indices = @transform_3, window_bounds = array<i64: 2, 4, 16>}]} {
    %c0 = arith.constant 0 : index
    %c0_0 = arith.constant 0 : index
    %c0_1 = arith.constant 0 : index
    %0 = vector.load %arg1[%c0, %c0_0, %c0_1] : memref<2x4x16xf32, #tpu.memory_space<vmem>>, vector<2x4x16xf32>
    %cst = arith.constant dense<0xFF800000> : vector<2x4xf32>
    %1 = vector.multi_reduction <maximumf>, %0, %cst [2] : vector<2x4x16xf32> to vector<2x4xf32>
    %cst_2 = arith.constant dense<0.000000e+00> : vector<2x4xf32>
    %2 = vector.multi_reduction <add>, %0, %cst_2 [2] : vector<2x4x16xf32> to vector<2x4xf32>
    %cst_3 = arith.constant 6.250000e-02 : f32
    %3 = vector.broadcast %cst_3 : f32 to vector<2x4xf32>
    %4 = arith.mulf %2, %3 : vector<2x4xf32>
    %5 = arith.addf %1, %4 : vector<2x4xf32>
    %c0_4 = arith.constant 0 : index
    %c0_5 = arith.constant 0 : index
    %6 = vector.load %arg2[%c0_4, %c0_5] : memref<4x4xf32, #tpu.memory_space<vmem>>, vector<4x4xf32>
    %cst_6 = arith.constant dense<0.000000e+00> : vector<2x4xf32>
    %7 = tpu.matmul %5, %6, %cst_6 {dimension_numbers = #tpu.dot_dimension_numbers<[1], [0], [0], [1], [0, 0, 1, 1], [], []>} : vector<2x4xf32>, vector<4x4xf32>, vector<2x4xf32> -> vector<2x4xf32>
    %c0_7 = arith.constant 0 : index
    %c0_8 = arith.constant 0 : index
    %8 = vector.load %arg3[%c0_7, %c0_8] : memref<1x4xf32, #tpu.memory_space<vmem>>, vector<1x4xf32>
    %9 = vector.broadcast %8 : vector<1x4xf32> to vector<2x4xf32>
    %10 = arith.addf %7, %9 : vector<2x4xf32>
    %11 = arith.negf %10 : vector<2x4xf32>
    %12 = math.exp %11 : vector<2x4xf32>
    %cst_9 = arith.constant 1.000000e+00 : f32
    %13 = vector.broadcast %cst_9 : f32 to vector<2x4xf32>
    %14 = arith.addf %13, %12 : vector<2x4xf32>
    %15 = arith.divf %13, %14 : vector<2x4xf32>
    %16 = vector.shape_cast %15 : vector<2x4xf32> to vector<2x4x1xf32>
    %17 = vector.broadcast %16 : vector<2x4x1xf32> to vector<2x4x16xf32>
    %18 = arith.mulf %17, %0 : vector<2x4x16xf32>
    %c0_10 = arith.constant 0 : index
    %c0_11 = arith.constant 0 : index
    %c0_12 = arith.constant 0 : index
    %19 = vector.load %arg4[%c0_10, %c0_11, %c0_12] : memref<2x4x16xf32, #tpu.memory_space<vmem>>, vector<2x4x16xf32>
    tpu.vector_store %arg4[%c0_10, %c0_11, %c0_12], %18 {strides = array<i32>} : memref<2x4x16xf32, #tpu.memory_space<vmem>>, vector<2x4x16xf32>,
    return
  }
  func.func @transform_0(%arg0: i32) -> (i32, i32, i32) {
    %c0_i32 = arith.constant 0 : i32
    %c0_i32_0 = arith.constant 0 : i32
    %c0_i32_1 = arith.constant 0 : i32
    return %arg0, %c0_i32, %c0_i32_0 : i32, i32, i32
  }
  func.func @transform_1(%arg0: i32) -> (i32, i32) {
    %c0_i32 = arith.constant 0 : i32
    %c0_i32_0 = arith.constant 0 : i32
    %c0_i32_1 = arith.constant 0 : i32
    return %c0_i32, %c0_i32_0 : i32, i32
  }
  func.func @transform_2(%arg0: i32) -> (i32, i32) {
    %c0_i32 = arith.constant 0 : i32
    %c0_i32_0 = arith.constant 0 : i32
    %c0_i32_1 = arith.constant 0 : i32
    return %c0_i32, %c0_i32_0 : i32, i32
  }
  func.func @transform_3(%arg0: i32) -> (i32, i32, i32) {
    %c0_i32 = arith.constant 0 : i32
    %c0_i32_0 = arith.constant 0 : i32
    %c0_i32_1 = arith.constant 0 : i32
    return %arg0, %c0_i32, %c0_i32_0 : i32, i32, i32
  }
}

</mosaic_0001>

<bundles_post_ra>
// kernel: tpu_custom_call.1
= control target key start
LH: loop header
LB: loop body
LE: loop exit
PB: predicated region body
PF: predicated region fallthrough
CT: control target
= control target key end

     0   :  { %8 = vsyncpa [#allocation3], 0  ;;  %s373_s0 = inlined_call_operand.hbm [shape: f32[2,4,16], index: 0, kind: input, shape index: {}]   ;;  %s374_s1 = inlined_call_operand.hbm [shape: f32[4,4], index: 1, kind: input, shape index: {}]   ;;  %s375_s2 = inlined_call_operand.vmem [shape: f32[1,4], index: 2, kind: input, shape index: {}]   ;;  %s376_s3 = inlined_call_operand.hbm [shape: f32[2,4,16], index: 3, kind: output, shape index: {}]  }
   0x1   :  { %9 = vsyncpa [#allocation6], 0 }
   0x2   :  { %10 = vsyncpa [#allocation4], 0  ;;  %s295_s12 = smov [#allocation2]   ;;  %s223_s16 = scalar_lea.hbm %s373_s0, 128 }
   0x3   :  { %s16_s13 = sshll.u32 %s295_s12, 4  ;;  %p224_p0 = scmp.ne.s32.totalorder %s373_s0, %s223_s16  ;;  %s17_s13 = int_to_ptr.vmem [resolvable:$true] %s16_s13 }
   0x4   :  { %p227_p1 = scmp.lt.u32.totalorder %s223_s16, %s373_s0 }
   0x6   :  { %p229_p2 = pnand %p227_p1, %p224_p0 }
   0x8   :  { %232 = shalt.err (!%p229_p2)
}
   0x9   :  { %s233_s21 = scalar_lea.vmem %s17_s13, 128  ;;  %p238_p4 = scmp.lt.s32.totalorder %s17_s13, %s17_s13 }
   0xa   :  { %p234_p3 = scmp.ne.s32.totalorder %s17_s13, %s233_s21  ;;  %p239_p5 = scmp.lt.s32.totalorder %s233_s21, %s233_s21 }
   0xc   :  { %p240_p6 = por %p239_p5, %p238_p4 }
   0xe   :  { %p241_p7 = pnand %p240_p6, %p234_p3 }
  0x10   :  { %244 = shalt.err (!%p241_p7)
}
  0x11   :  { %s296_s22 = smov 64   ;;  %s297_s23 = smov 4  }
  0x12   :  { %22 = dma.hbm_to_vmem [thread:$0]  %s373_s0, 128, %s17_s13, [#allocation3], %s296_s22, %s296_s22, %s297_s23  }
  0x13   :  { %s298_s26 = smov [#allocation5]   ;;  %s245_s30 = scalar_lea.hbm %s374_s1, 64 }
  0x14   :  { %s29_s27 = sshll.u32 %s298_s26, 4  ;;  %p246_p8 = scmp.ne.s32.totalorder %s374_s1, %s245_s30  ;;  %s30_s27 = int_to_ptr.vmem [resolvable:$true] %s29_s27 }
  0x15   :  { %p249_p9 = scmp.lt.u32.totalorder %s245_s30, %s374_s1 }
  0x17   :  { %p251_p10 = pnand %p249_p9, %p246_p8 }
  0x19   :  { %254 = shalt.err (!%p251_p10)
}
  0x1a   :  { %s255_s8 = scalar_lea.vmem %s30_s27, 64  ;;  %p260_p12 = scmp.lt.s32.totalorder %s30_s27, %s30_s27 }
  0x1b   :  { %p256_p11 = scmp.ne.s32.totalorder %s30_s27, %s255_s8  ;;  %p261_p13 = scmp.lt.s32.totalorder %s255_s8, %s255_s8 }
  0x1d   :  { %p262_p0 = por %p261_p13, %p260_p12 }
  0x1f   :  { %p263_p1 = pnand %p262_p0, %p256_p11 }
  0x21   :  { %266 = shalt.err (!%p263_p1)
}
  0x22   :  { %32 = dma.hbm_to_vmem [thread:$0]  %s374_s1, 64, %s30_s27, [#allocation6]  }
  0x23   :  { %289 = dma.done.wait [#allocation3], 128  }
  0x24   :  { %290 = vsyncadd [#allocation3], 4294967168 }
  0x25   :  { %291 = dma.done.wait [#allocation6], 64  }
  0x26   :  { %292 = vsyncadd [#allocation6], 4294967232  ;;  %vm43_vm0 = vcmask 125952   ;;  %v41_v0 = vld [vmem:[#allocation2] sm:$0xf]  ;;  %vm85_vm1 = vcmask 1043456   ;;  %v70_v8 = vlaneseq }
  0x27   :  { %v42_v1 = vld [vmem:[#allocation2 + $0x4] sm:$0xf]  ;;  %v50_v2 = vsel %vm43_vm0, %v41_v0, 0.0  ;;  %v44_v3 = vsel %vm43_vm0, %v41_v0, -inf  ;;  %v60_v6 = vld [vmem:[#allocation5] sm:$0xf] }
  0x28   :  { %51 = vadd.xlane.f32.xlu0 %v50_v2  ;;  %45 = vmax.xlane.f32.xlu1 %v44_v3  ;;  %v53_v4 = vsel %vm43_vm0, %v42_v1, 0.0  ;;  %v47_v5 = vsel %vm43_vm0, %v42_v1, -inf  ;;  %v299_v7 = vmov 0.0   ;;  %vm300_vm2 = vmmov 0   ;;  %v201_v23 = vld [vmem:[%s375_s2] ss:$0 sm:$0xff] }
  0x29   :  { %207 = vmatprep.subr.mxu0 %v299_v7  ;;  %209 = vmatprep.mubr.msk.f32.mxu0 %vm300_vm2, %v299_v7  ;;  %v71_v12 = vand.u32 127, %v70_v8  ;;  %v73_v13 = vshrl.u32 %v70_v8, 7  ;;  %vm80_vm3 = vcmask 1041409   ;;  %vm82_vm4 = vcmask 31744   ;;  %s301_s11 = smov [#allocation7]  }
  0x2a   :  { %208 = vmatpush3.msk.msra.mxu0 %vm85_vm1, %v60_v6  ;;  %s188_s12 = sshll.u32 %s301_s11, 4  ;;  %s189_s12 = int_to_ptr.vmem [resolvable:$true] %s188_s12 }
  0x2b   :  { %v74_v16 = vsub.s32 %v71_v12, %v73_v13  ;;  %v174_v30 = vsub.s32 1, %v73_v13  ;;  %v167_v31 = vsub.s32 0, %v73_v13  ;;  %s267_s2 = scalar_lea.vmem %s189_s12, 128  ;;  %p272_p3 = scmp.lt.s32.totalorder %s189_s12, %s189_s12 }
  0x2c   :  { %54 = vadd.xlane.f32.xlu0 %v53_v4  ;;  %48 = vmax.xlane.f32.xlu1 %v47_v5  ;;  %p268_p2 = scmp.ne.s32.totalorder %s189_s12, %s267_s2  ;;  %p273_p4 = scmp.lt.s32.totalorder %s267_s2, %s267_s2 }
  0x2e   :  { %p274_p5 = por %p273_p4, %p272_p3 }
  0x30   :  { %p275_p6 = pnand %p274_p5, %p268_p2 }
  0xb5   :  { %v52_v9 = vpop.xlane.xlu0 %51  ;;  %v46_v10 = vpop.xlane.xlu1 %45 }
  0xb6   :  { %v56_v11 = vmul.f32 0.0625, %v52_v9 }
  0xb8   :  { %v58_v17 = vadd.f32 %v56_v11, %v46_v10 }
  0xb9   :  { %v55_v14 = vpop.xlane.xlu0 %54  ;;  %v49_v15 = vpop.xlane.xlu1 %48 }
  0xba   :  { %v57_v18 = vmul.f32 0.0625, %v55_v14  ;;  %v75_v20 = vrot.slane %v58_v17, %v74_v16 }
  0xbc   :  { %v59_v19 = vadd.f32 %v57_v18, %v49_v15 }
  0xbe   :  { %v79_v21 = vrot.slane %v59_v19, %v74_v16 }
  0xc0   :  { %v81_v22 = vsel %vm80_vm3, %v79_v21, %v75_v20 }
  0xc1   :  { %210 = vmatmul.mubr.msk.f32.vlgmr.msra.gmra.mrb[0].mxu0 %vm82_vm4, %v81_v22 }
 0x194   :  { %v155_v24 = vpop.f32.mrb[0].mxu0 }
 0x195   :  { %v156_v25 = vadd.f32 %v201_v23, %v155_v24  ;;  %v211_v26 = vpop.f32.mrb[1].mxu0 }
 0x197   :  { %v204_v27 = vmul.f32 -1.442695, %v156_v25 }
 0x199   :  { %219 = vpow2.f32 %v204_v27 }
 0x1a3   :  { %v220_v28 = vpop.eup %219 }
 0x1a4   :  { %v162_v29 = vadd.f32 1.0, %v220_v28 }
 0x1a6   :  { %221 = vrcp.f32 %v162_v29 }
 0x1b0   :  { %v222_v32 = vpop.eup %221 }
 0x1b1   :  { %v175_v33 = vrot.slane %v222_v32, %v174_v30  ;;  %v168_v34 = vrot.slane %v222_v32, %v167_v31 }
 0x1b3   :  { %177 = vbcast.lane.b32.xlu1 %v175_v33, 256  ;;  %170 = vbcast.lane.b32.xlu0 %v168_v34, 256 }
 0x225   :  { %v178_v35 = vpop.permute.xlu1 %177  ;;  %v171_v36 = vpop.permute.xlu0 %170 }
 0x226   :  { %v180_v37 = vmul.f32 %v178_v35, %v42_v1  ;;  %v179_v38 = vmul.f32 %v171_v36, %v41_v0 }
 0x228   :  { %182 = vst.msk [vmem:[#allocation7 + $0x4] sm:$0xf] %vm43_vm0, %v180_v37  ;;  %181 = vst.msk [vmem:[#allocation7] sm:$0xf] %vm43_vm0, %v179_v38 }
 0x229   :  { %278 = shalt.err (!%p275_p6)
}
 0x22a   :  { %s279_s15 = scalar_lea.hbm %s376_s3, 128 }
 0x22b   :  { %p280_p7 = scmp.ne.s32.totalorder %s376_s3, %s279_s15  ;;  %p283_p8 = scmp.lt.u32.totalorder %s279_s15, %s376_s3 }
 0x22d   :  { %p285_p9 = pnand %p283_p8, %p280_p7 }
 0x22f   :  { %288 = shalt.err (!%p285_p9)
}
 0x230   :  { %194 = dma.vmem_to_hbm [thread:$0]  %s189_s12, 128, %s376_s3, [#allocation4], %s296_s22, %s296_s22, %s297_s23  }
 0x231   :  { %293 = dma.done.wait [#allocation4], 128  }
 0x232   :  { %294 = vsyncadd [#allocation4], 4294967168 }
 0x233   :  { %198 = vsyncpa [#allocation3], 1 }
 0x234   :  { %199 = vsyncpa [#allocation6], 1 }
 0x235   :  { %200 = vsyncpa [#allocation4], 1 }

</bundles_post_ra>
